<compile_context>
chip_gen: v5e
topology: v5e:2x2
jax: 0.10.0
libtpu: 0.0.40
codegen_flags: <defaults>
</compile_context>

<pallas_src>
import numpy as np
import jax
import jax.numpy as jnp
from jax.experimental import pallas as pl
from jax.experimental.pallas import tpu as pltpu

_SIZES = (1, 3, 6, 8)
_LANE = 128


def _round_up(x, m):
    return ((x + m - 1) // m) * m


def _pool_matrix(in_size: int, out_size: int) -> np.ndarray:
    """(out_size, in_size) matrix implementing 1-D adaptive average pooling."""
    p = np.zeros((out_size, in_size), np.float32)
    for i in range(out_size):
        s = (i * in_size) // out_size
        e = ((i + 1) * in_size + out_size - 1) // out_size  # ceil, PyTorch semantics
        p[i, s:e] = 1.0 / (e - s)
    return p


def build_pool_matrix(h: int, w: int, sizes=_SIZES) -> np.ndarray:
    """(L, H*W): row k holds the averaging weights of flattened output element k."""
    blocks = []
    for s in sizes:
        ph = _pool_matrix(h, s)                      # (s, h)
        pw = _pool_matrix(w, s)                      # (s, w)
        blocks.append(np.kron(ph, pw))               # (s*s, h*w), row-major (i, j)
    return np.concatenate(blocks, axis=0)


def aspp_kernel(x_ref, mt_ref, o_ref, acc_ref):
    # x_ref: (tr, tk)  mt_ref: (tk, Lp)  o_ref: (tr, Lp)  acc_ref: (tr, Lp) f32
    k = pl.program_id(1)

    @pl.when(k == 0)
    def _():
        acc_ref[...] = jnp.zeros_like(acc_ref)

    acc_ref[...] += jnp.dot(x_ref[...], mt_ref[...],
                            preferred_element_type=jnp.float32)

    @pl.when(k == pl.num_programs(1) - 1)
    def _():
        o_ref[...] = acc_ref[...].astype(o_ref.dtype)


def _plan(rows, hw, lp, itemsize):
    """Pick (row tile, reduction tile, #k steps, padded H*W, vmem limit)."""
    g = {4: 8, 2: 16, 1: 32}.get(itemsize, 8)        # sublane granularity per dtype
    try:
        cap = int(pltpu.get_tpu_info().vmem_capacity_bytes)
    except Exception:
        cap = 64 << 20                               # conservative (v7x per-TC VMEM)
    vmem_cap = int(cap * 0.70)                       # leave compiler headroom
    block_budget = (14 << 20) if cap <= (64 << 20) else (28 << 20)

    def per_row(tk):                                 # VMEM bytes per output row
        # double-buffered x row + double-buffered out row + f32 accumulator row
        return 2 * tk * itemsize + 2 * lp * itemsize + lp * 4

    rows_g = _round_up(max(rows, 1), g)

    # Reduction tile: full H*W if a minimal row tile plus a (conservatively
    # double-buffered) pooling matrix fits the budget; else K-tile in lane multiples.
    tk = hw
    if per_row(tk) * g + 2 * tk * lp * itemsize > block_budget:
        tr_target = max(g, min(512, rows_g))
        num = block_budget - tr_target * (2 * lp * itemsize + lp * 4)
        den = 2 * itemsize * (tr_target + lp)
        tk = max(_LANE, (num // den) // _LANE * _LANE)
        tk = min(tk, _round_up(hw, _LANE))
    hw_p = hw if tk == hw else _round_up(hw, tk)
    num_k = hw_p // tk

    # Row tile: as many rows as the budget allows (~512 rows saturates HBM
    # streaming), >= 2 tiles when possible (v7x megacore), prefer exact divisors.
    mt_bytes = 2 * tk * lp * itemsize
    tr = max(g, (block_budget - mt_bytes) // per_row(tk))
    tr = max(g, min(512, rows_g, tr) // g * g)
    if rows_g >= 2 * g and _round_up(rows, tr) // tr < 2:
        tr = max(g, (rows_g // 2) // g * g)
    for cand in range(tr, max(g, tr // 2) - 1, -g):
        if rows % cand == 0:
            tr = cand
            break

    vmem_need = 2 * tr * (tk + lp) * itemsize + mt_bytes + tr * lp * 4 + (2 << 20)
    vmem_limit = int(min(max(vmem_need, 8 << 20), vmem_cap))
    return tr, tk, num_k, hw_p, vmem_limit


def _pallas_forward(x2, mt, tr, tk, num_k, lp, vmem_limit, single_buffer_mt):
    rows_p = x2.shape[0]
    # NOTE: for tiny per-step blocks one could also sweep pl.Buffered(3) on the x
    # spec to hide DMA issue latency; not needed at these sizes.
    mt_kwargs = {"pipeline_mode": pl.Buffered(1)} if single_buffer_mt else {}
    return pl.pallas_call(
        aspp_kernel,
        out_shape=jax.ShapeDtypeStruct((rows_p, lp), x2.dtype),
        grid=(rows_p // tr, num_k),
        in_specs=[
            pl.BlockSpec((tr, tk), lambda r, k: (r, k)),
            pl.BlockSpec((tk, lp), lambda r, k: (k, 0), **mt_kwargs),
        ],
        out_specs=pl.BlockSpec((tr, lp), lambda r, k: (r, 0)),
        scratch_shapes=[pltpu.VMEM((tr, lp), jnp.float32)],
        compiler_params=pltpu.CompilerParams(
            dimension_semantics=("parallel", "arbitrary"),
            vmem_limit_bytes=vmem_limit,
        ),
    )(x2, mt)


def aspp_module(feats, sizes=_SIZES):
    """feats: (N, C, H, W) -> (N, C, sum(s*s for s in sizes)). Matches ASPPModule."""
    n, c, h, w = feats.shape
    hw = h * w
    rows = n * c
    m = build_pool_matrix(h, w, sizes)               # (L, hw) on host
    l = m.shape[0]
    lp = _round_up(l, _LANE)                         # lane-dense output (unmasked vst)
    itemsize = np.dtype(feats.dtype).itemsize

    tr, tk, num_k, hw_p, vmem_limit = _plan(rows, hw, lp, itemsize)
    rows_p = _round_up(rows, tr)

    # Zero-padded pooling matrix (hw_p, lp); padded rows/columns contribute nothing.
    mt_np = np.zeros((hw_p, lp), np.float32)
    mt_np[:hw, :l] = m.T
    mt = jnp.asarray(mt_np, dtype=feats.dtype)

    x2 = feats.reshape(rows, hw)                     # lane-dense last dim
    if rows_p != rows or hw_p != hw:
        x2 = jnp.pad(x2, ((0, rows_p - rows), (0, hw_p - hw)))

    single = (num_k == 1) and hasattr(pl, "Buffered")
    if single:
        try:
            out2 = _pallas_forward(x2, mt, tr, tk, num_k, lp, vmem_limit, True)
        except Exception:
            # Fallback: default (double-buffered) pooling-matrix spec.
            out2 = _pallas_forward(x2, mt, tr, tk, num_k, lp, vmem_limit, False)
    else:
        out2 = _pallas_forward(x2, mt, tr, tk, num_k, lp, vmem_limit, False)

    return out2[:rows, :l].reshape(n, c, l)          # strip row / L padding


def ref_forward(feats, sizes=_SIZES):
    """Pure-JAX mirror of the PyTorch module (explicit adaptive pooling slices)."""
    n, c, h, w = feats.shape
    outs = []
    for s in sizes:
        rows = []
        for i in range(s):
            hs = (i * h) // s
            he = ((i + 1) * h + s - 1) // s
            cols = []
            for j in range(s):
                ws = (j * w) // s
                we = ((j + 1) * w + s - 1) // s
                cols.append(jnp.mean(feats[:, :, hs:he, ws:we], axis=(2, 3)))
            rows.append(jnp.stack(cols, axis=-1))    # (n, c, s)
        outs.append(jnp.stack(rows, axis=-2).reshape(n, c, s * s))
    return jnp.concatenate(outs, axis=-1)            # (n, c, sum(s*s))


if __name__ == "__main__":
    key = jax.random.PRNGKey(0)
    N, C, H, W = 2, 4, 16, 16
    feats = jax.random.normal(key, (N, C, H, W), jnp.float32)

    out = aspp_module(feats)
    out = jax.block_until_ready(out)

    L = sum(s * s for s in _SIZES)                   # 1 + 9 + 36 + 64 = 110
    ref = ref_forward(feats)
    assert out.shape == (N, C, L) and out.dtype == jnp.float32
    err = float(jnp.max(jnp.abs(out - ref)))
    # Tolerance leaves headroom for the MXU's f32 pass decomposition vs the exact
    # sliced means used in the reference.
    assert err < 2e-3, f"max abs err {err}"
    print("KERNEL_OK")
</pallas_src>

<mosaic_0001>
module attributes {stable_mosaic.version = 11 : i64} {
  func.func @aspp_kernel(%arg0: i32, %arg1: i32, %arg2: memref<8x256xf32, #tpu.memory_space<vmem>>, %arg3: memref<256x128xf32, #tpu.memory_space<vmem>>, %arg4: memref<8x128xf32, #tpu.memory_space<vmem>>, %arg5: memref<8x128xf32, #tpu.memory_space<vmem>>) attributes {dimension_semantics = [#tpu.dimension_semantics<parallel>, #tpu.dimension_semantics<arbitrary>], iteration_bounds = array<i64: 1, 1>, scalar_prefetch = 0 : i64, scratch_operands = 1 : i64, tpu.core_type = #tpu.core_type<tc>, window_params = [{transform_indices = @transform_0, window_bounds = array<i64: 8, 256>}, {pipeline_mode = #tpu.pipeline_mode<synchronous>, transform_indices = @transform_1, window_bounds = array<i64: 256, 128>}, {transform_indices = @transform_2, window_bounds = array<i64: 8, 128>}]} {
    %c0_i32 = arith.constant 0 : i32
    %0 = arith.cmpi eq, %arg1, %c0_i32 : i32
    %1 = arith.extui %0 : i1 to i32
    %c0_i32_0 = arith.constant 0 : i32
    %2 = arith.cmpi ne, %1, %c0_i32_0 : i32
    scf.if %2 {
      %cst_10 = arith.constant 0.000000e+00 : f32
      %12 = vector.broadcast %cst_10 : f32 to vector<8x128xf32>
      %c0_11 = arith.constant 0 : index
      %c0_12 = arith.constant 0 : index
      %13 = vector.load %arg5[%c0_11, %c0_12] : memref<8x128xf32, #tpu.memory_space<vmem>>, vector<8x128xf32>
      tpu.vector_store %arg5[%c0_11, %c0_12], %12 {strides = array<i32>} : memref<8x128xf32, #tpu.memory_space<vmem>>, vector<8x128xf32>,
    } else {
    }
    %c0 = arith.constant 0 : index
    %c0_1 = arith.constant 0 : index
    %3 = vector.load %arg5[%c0, %c0_1] : memref<8x128xf32, #tpu.memory_space<vmem>>, vector<8x128xf32>
    %c0_2 = arith.constant 0 : index
    %c0_3 = arith.constant 0 : index
    %4 = vector.load %arg2[%c0_2, %c0_3] : memref<8x256xf32, #tpu.memory_space<vmem>>, vector<8x256xf32>
    %c0_4 = arith.constant 0 : index
    %c0_5 = arith.constant 0 : index
    %5 = vector.load %arg3[%c0_4, %c0_5] : memref<256x128xf32, #tpu.memory_space<vmem>>, vector<256x128xf32>
    %cst = arith.constant dense<0.000000e+00> : vector<8x128xf32>
    %6 = tpu.matmul %4, %5, %cst {dimension_numbers = #tpu.dot_dimension_numbers<[1], [0], [0], [1], [0, 0, 1, 1], [], []>} : vector<8x256xf32>, vector<256x128xf32>, vector<8x128xf32> -> vector<8x128xf32>
    %7 = arith.addf %3, %6 : vector<8x128xf32>
    %c0_6 = arith.constant 0 : index
    %c0_7 = arith.constant 0 : index
    %8 = vector.load %arg5[%c0_6, %c0_7] : memref<8x128xf32, #tpu.memory_space<vmem>>, vector<8x128xf32>
    tpu.vector_store %arg5[%c0_6, %c0_7], %7 {strides = array<i32>} : memref<8x128xf32, #tpu.memory_space<vmem>>, vector<8x128xf32>,
    %c0_i32_8 = arith.constant 0 : i32
    %9 = arith.cmpi eq, %arg1, %c0_i32_8 : i32
    %10 = arith.extui %9 : i1 to i32
    %c0_i32_9 = arith.constant 0 : i32
    %11 = arith.cmpi ne, %10, %c0_i32_9 : i32
    scf.if %11 {
      %c0_10 = arith.constant 0 : index
      %c0_11 = arith.constant 0 : index
      %12 = vector.load %arg5[%c0_10, %c0_11] : memref<8x128xf32, #tpu.memory_space<vmem>>, vector<8x128xf32>
      %c0_12 = arith.constant 0 : index
      %c0_13 = arith.constant 0 : index
      %13 = vector.load %arg4[%c0_12, %c0_13] : memref<8x128xf32, #tpu.memory_space<vmem>>, vector<8x128xf32>
      tpu.vector_store %arg4[%c0_12, %c0_13], %12 {strides = array<i32>} : memref<8x128xf32, #tpu.memory_space<vmem>>, vector<8x128xf32>,
    } else {
    }
    return
  }
  func.func @transform_0(%arg0: i32, %arg1: i32) -> (i32, i32) {
    %c0_i32 = arith.constant 0 : i32
    return %arg0, %arg1 : i32, i32
  }
  func.func @transform_1(%arg0: i32, %arg1: i32) -> (i32, i32) {
    %c0_i32 = arith.constant 0 : i32
    %c0_i32_0 = arith.constant 0 : i32
    return %arg1, %c0_i32 : i32, i32
  }
  func.func @transform_2(%arg0: i32, %arg1: i32) -> (i32, i32) {
    %c0_i32 = arith.constant 0 : i32
    %c0_i32_0 = arith.constant 0 : i32
    return %arg0, %c0_i32 : i32, i32
  }
}

module attributes {stable_mosaic.version = 11 : i64} {
  func.func @aspp_kernel(%arg0: i32, %arg1: i32, %arg2: memref<8x256xf32, #tpu.memory_space<vmem>>, %arg3: memref<256x128xf32, #tpu.memory_space<vmem>>, %arg4: memref<8x128xf32, #tpu.memory_space<vmem>>, %arg5: memref<8x128xf32, #tpu.memory_space<vmem>>) attributes {dimension_semantics = [#tpu.dimension_semantics<parallel>, #tpu.dimension_semantics<arbitrary>], iteration_bounds = array<i64: 1, 1>, scalar_prefetch = 0 : i64, scratch_operands = 1 : i64, tpu.core_type = #tpu.core_type<tc>, window_params = [{transform_indices = @transform_0, window_bounds = array<i64: 8, 256>}, {transform_indices = @transform_1, window_bounds = array<i64: 256, 128>}, {transform_indices = @transform_2, window_bounds = array<i64: 8, 128>}]} {
    %c0_i32 = arith.constant 0 : i32
    %0 = arith.cmpi eq, %arg1, %c0_i32 : i32
    %1 = arith.extui %0 : i1 to i32
    %c0_i32_0 = arith.constant 0 : i32
    %2 = arith.cmpi ne, %1, %c0_i32_0 : i32
    scf.if %2 {
      %cst_10 = arith.constant 0.000000e+00 : f32
      %12 = vector.broadcast %cst_10 : f32 to vector<8x128xf32>
      %c0_11 = arith.constant 0 : index
      %c0_12 = arith.constant 0 : index
      %13 = vector.load %arg5[%c0_11, %c0_12] : memref<8x128xf32, #tpu.memory_space<vmem>>, vector<8x128xf32>
      tpu.vector_store %arg5[%c0_11, %c0_12], %12 {strides = array<i32>} : memref<8x128xf32, #tpu.memory_space<vmem>>, vector<8x128xf32>,
    } else {
    }
    %c0 = arith.constant 0 : index
    %c0_1 = arith.constant 0 : index
    %3 = vector.load %arg5[%c0, %c0_1] : memref<8x128xf32, #tpu.memory_space<vmem>>, vector<8x128xf32>
    %c0_2 = arith.constant 0 : index
    %c0_3 = arith.constant 0 : index
    %4 = vector.load %arg2[%c0_2, %c0_3] : memref<8x256xf32, #tpu.memory_space<vmem>>, vector<8x256xf32>
    %c0_4 = arith.constant 0 : index
    %c0_5 = arith.constant 0 : index
    %5 = vector.load %arg3[%c0_4, %c0_5] : memref<256x128xf32, #tpu.memory_space<vmem>>, vector<256x128xf32>
    %cst = arith.constant dense<0.000000e+00> : vector<8x128xf32>
    %6 = tpu.matmul %4, %5, %cst {dimension_numbers = #tpu.dot_dimension_numbers<[1], [0], [0], [1], [0, 0, 1, 1], [], []>} : vector<8x256xf32>, vector<256x128xf32>, vector<8x128xf32> -> vector<8x128xf32>
    %7 = arith.addf %3, %6 : vector<8x128xf32>
    %c0_6 = arith.constant 0 : index
    %c0_7 = arith.constant 0 : index
    %8 = vector.load %arg5[%c0_6, %c0_7] : memref<8x128xf32, #tpu.memory_space<vmem>>, vector<8x128xf32>
    tpu.vector_store %arg5[%c0_6, %c0_7], %7 {strides = array<i32>} : memref<8x128xf32, #tpu.memory_space<vmem>>, vector<8x128xf32>,
    %c0_i32_8 = arith.constant 0 : i32
    %9 = arith.cmpi eq, %arg1, %c0_i32_8 : i32
    %10 = arith.extui %9 : i1 to i32
    %c0_i32_9 = arith.constant 0 : i32
    %11 = arith.cmpi ne, %10, %c0_i32_9 : i32
    scf.if %11 {
      %c0_10 = arith.constant 0 : index
      %c0_11 = arith.constant 0 : index
      %12 = vector.load %arg5[%c0_10, %c0_11] : memref<8x128xf32, #tpu.memory_space<vmem>>, vector<8x128xf32>
      %c0_12 = arith.constant 0 : index
      %c0_13 = arith.constant 0 : index
      %13 = vector.load %arg4[%c0_12, %c0_13] : memref<8x128xf32, #tpu.memory_space<vmem>>, vector<8x128xf32>
      tpu.vector_store %arg4[%c0_12, %c0_13], %12 {strides = array<i32>} : memref<8x128xf32, #tpu.memory_space<vmem>>, vector<8x128xf32>,
    } else {
    }
    return
  }
  func.func @transform_0(%arg0: i32, %arg1: i32) -> (i32, i32) {
    %c0_i32 = arith.constant 0 : i32
    return %arg0, %arg1 : i32, i32
  }
  func.func @transform_1(%arg0: i32, %arg1: i32) -> (i32, i32) {
    %c0_i32 = arith.constant 0 : i32
    %c0_i32_0 = arith.constant 0 : i32
    return %arg1, %c0_i32 : i32, i32
  }
  func.func @transform_2(%arg0: i32, %arg1: i32) -> (i32, i32) {
    %c0_i32 = arith.constant 0 : i32
    %c0_i32_0 = arith.constant 0 : i32
    return %arg0, %c0_i32 : i32, i32
  }
}

</mosaic_0001>

<bundles_post_ra>
// kernel: tpu_custom_call.1
= control target key start
LH: loop header
LB: loop body
LE: loop exit
PB: predicated region body
PF: predicated region fallthrough
CT: control target
= control target key end

     0   :  { %7 = vsyncpa [#allocation4], 0  ;;  %s259_s0 = inlined_call_operand.hbm [shape: f32[8,256], index: 0, kind: input, shape index: {}]   ;;  %s260_s1 = inlined_call_operand.hbm [shape: f32[256,128], index: 1, kind: input, shape index: {}]   ;;  %s261_s2 = inlined_call_operand.hbm [shape: f32[8,128], index: 2, kind: output, shape index: {}]  }
   0x1   :  { %8 = vsyncpa [#allocation7], 0 }
   0x2   :  { %9 = vsyncpa [#allocation5], 0  ;;  %s15_s11 = sshll.u32 %s259_s0, 4  ;;  %s230_s12 = smov [#allocation3]   ;;  %s16_s11 = int_to_ptr.hbm [resolvable:$true] %s15_s11 }
   0x3   :  { %s17_s13 = sshll.u32 %s230_s12, 4  ;;  %s25_s16 = sshll.u32 %s260_s1, 4  ;;  %s18_s13 = int_to_ptr.vmem [resolvable:$true] %s17_s13  ;;  %s26_s16 = int_to_ptr.hbm [resolvable:$true] %s25_s16 }
   0x4   :  { %20 = dma.hbm_to_vmem [thread:$0]  %s16_s11, 256, %s18_s13, [#allocation4]  }
   0x5   :  { %s231_s17 = smov [#allocation6]   ;;  %s232_s19 = smov 128  }
   0x6   :  { %s27_s18 = sshll.u32 %s231_s17, 4  ;;  %s233_s20 = smov 8   ;;  %s28_s18 = int_to_ptr.vmem [resolvable:$true] %s27_s18 }
   0x7   :  { %33 = dma.hbm_to_vmem [thread:$0]  %s26_s16, 4096, %s28_s18, [#allocation7], %s232_s19, %s232_s19, %s233_s20  }
   0x8   :  { %224 = dma.done.wait [#allocation4], 256  }
   0x9   :  { %225 = vsyncadd [#allocation4], 4294967040 }
   0xa   :  { %226 = dma.done.wait [#allocation7], 4096  }
   0xb   :  { %227 = vsyncadd [#allocation7], 4294963200  ;;  %v65_v0 = vld [vmem:[#allocation6 + $0x78] sm:$0xff]  ;;  %v64_v2 = vld [vmem:[#allocation6 + $0x70] sm:$0xff]  ;;  %s234_s0 = smov [#allocation8]   ;;  %s136_s23 = sshll.u32 %s261_s2, 4  ;;  %s137_s23 = int_to_ptr.hbm [resolvable:$true] %s136_s23 }
   0xc   :  { %v81_v1 = vld [vmem:[#allocation6 + $0xf8] sm:$0xff]  ;;  %82 = vmatpush.msra.mxu0 %v65_v0  ;;  %v80_v3 = vld [vmem:[#allocation6 + $0xf0] sm:$0xff]  ;;  %v63_v4 = vld [vmem:[#allocation6 + $0x68] sm:$0xff]  ;;  %s134_s1 = sshll.u32 %s234_s0, 4  ;;  %s135_s1 = int_to_ptr.vmem [resolvable:$true] %s134_s1 }
   0xd   :  { %102 = vmatpush.msra.mxu1 %v81_v1  ;;  %v79_v5 = vld [vmem:[#allocation6 + $0xe8] sm:$0xff]  ;;  %v62_v6 = vld [vmem:[#allocation6 + $0x60] sm:$0xff]  ;;  %v61_v8 = vld [vmem:[#allocation6 + $0x58] sm:$0xff] }
   0xe   :  { %83 = vmatpush.msra.mxu0 %v64_v2  ;;  %v78_v7 = vld [vmem:[#allocation6 + $0xe0] sm:$0xff]  ;;  %v77_v9 = vld [vmem:[#allocation6 + $0xd8] sm:$0xff]  ;;  %v60_v10 = vld [vmem:[#allocation6 + $0x50] sm:$0xff] }
   0xf   :  { %103 = vmatpush.msra.mxu1 %v80_v3  ;;  %v76_v11 = vld [vmem:[#allocation6 + $0xd0] sm:$0xff]  ;;  %v59_v12 = vld [vmem:[#allocation6 + $0x48] sm:$0xff]  ;;  %v58_v14 = vld [vmem:[#allocation6 + $0x40] sm:$0xff] }
  0x10   :  { %84 = vmatpush.msra.mxu0 %v63_v4  ;;  %v75_v13 = vld [vmem:[#allocation6 + $0xc8] sm:$0xff]  ;;  %v74_v15 = vld [vmem:[#allocation6 + $0xc0] sm:$0xff]  ;;  %v57_v16 = vld [vmem:[#allocation6 + $0x38] sm:$0xff] }
  0x11   :  { %104 = vmatpush.msra.mxu1 %v79_v5  ;;  %v73_v17 = vld [vmem:[#allocation6 + $0xb8] sm:$0xff]  ;;  %v56_v18 = vld [vmem:[#allocation6 + $0x30] sm:$0xff]  ;;  %v55_v20 = vld [vmem:[#allocation6 + $0x28] sm:$0xff] }
  0x12   :  { %85 = vmatpush.msra.mxu0 %v62_v6  ;;  %v72_v19 = vld [vmem:[#allocation6 + $0xb0] sm:$0xff]  ;;  %v71_v21 = vld [vmem:[#allocation6 + $0xa8] sm:$0xff]  ;;  %v54_v22 = vld [vmem:[#allocation6 + $0x20] sm:$0xff] }
  0x13   :  { %105 = vmatpush.msra.mxu1 %v78_v7  ;;  %v70_v23 = vld [vmem:[#allocation6 + $0xa0] sm:$0xff]  ;;  %v53_v24 = vld [vmem:[#allocation6 + $0x18] sm:$0xff]  ;;  %v52_v26 = vld [vmem:[#allocation6 + $0x10] sm:$0xff] }
  0x14   :  { %86 = vmatpush.msra.mxu0 %v61_v8  ;;  %v69_v25 = vld [vmem:[#allocation6 + $0x98] sm:$0xff]  ;;  %v68_v27 = vld [vmem:[#allocation6 + $0x90] sm:$0xff]  ;;  %v51_v28 = vld [vmem:[#allocation6 + $0x8] sm:$0xff] }
  0x15   :  { %106 = vmatpush.msra.mxu1 %v77_v9  ;;  %v67_v29 = vld [vmem:[#allocation6 + $0x88] sm:$0xff]  ;;  %v50_v30 = vld [vmem:[#allocation6] sm:$0xff]  ;;  %v48_v32 = vld [vmem:[#allocation3] sm:$0xff] }
  0x16   :  { %87 = vmatpush.msra.mxu0 %v60_v10  ;;  %v66_v31 = vld [vmem:[#allocation6 + $0x80] sm:$0xff]  ;;  %v49_v33 = vld [vmem:[#allocation3 + $0x8] sm:$0xff] }
  0x17   :  { %107 = vmatpush.msra.mxu1 %v76_v11 }
  0x18   :  { %88 = vmatpush.msra.mxu0 %v59_v12 }
  0x19   :  { %108 = vmatpush.msra.mxu1 %v75_v13 }
  0x1a   :  { %89 = vmatpush.msra.mxu0 %v58_v14 }
  0x1b   :  { %109 = vmatpush.msra.mxu1 %v74_v15 }
  0x1c   :  { %90 = vmatpush.msra.mxu0 %v57_v16 }
  0x1d   :  { %110 = vmatpush.msra.mxu1 %v73_v17 }
  0x1e   :  { %91 = vmatpush.msra.mxu0 %v56_v18 }
  0x1f   :  { %111 = vmatpush.msra.mxu1 %v72_v19 }
  0x20   :  { %92 = vmatpush.msra.mxu0 %v55_v20 }
  0x21   :  { %112 = vmatpush.msra.mxu1 %v71_v21 }
  0x22   :  { %93 = vmatpush.msra.mxu0 %v54_v22 }
  0x23   :  { %113 = vmatpush.msra.mxu1 %v70_v23 }
  0x24   :  { %94 = vmatpush.msra.mxu0 %v53_v24 }
  0x25   :  { %114 = vmatpush.msra.mxu1 %v69_v25 }
  0x26   :  { %95 = vmatpush.msra.mxu0 %v52_v26 }
  0x27   :  { %115 = vmatpush.msra.mxu1 %v68_v27 }
  0x28   :  { %96 = vmatpush.msra.mxu0 %v51_v28 }
  0x29   :  { %116 = vmatpush.msra.mxu1 %v67_v29 }
  0x2a   :  { %97 = vmatpush.msra.mxu0 %v50_v30 }
  0x2b   :  { %117 = vmatpush.msra.mxu1 %v66_v31  ;;  %98 = vmatmul.f32.vlgmr.msra.gmra.mxu0 %v48_v32 }
  0x2c   :  { %118 = vmatmul.f32.vlgmr.msra.gmra.mxu1 %v49_v33 }
  0xa8   :  { %v99_v34 = vpop.f32.mrf.mxu0 }
  0xa9   :  { %v119_v35 = vpop.f32.mrf.mxu1 }
  0xaa   :  { %v120_v36 = vadd.f32 %v119_v35, %v99_v34 }
  0xac   :  { %128 = vst [vmem:[#allocation8] sm:$0xff] %v120_v36 }
  0xad   :  { %139 = dma.vmem_to_hbm [thread:$0]  %s135_s1, 128, %s137_s23, [#allocation5]  }
  0xae   :  { %228 = dma.done.wait [#allocation5], 128  }
  0xaf   :  { %229 = vsyncadd [#allocation5], 4294967168 }
  0xb0   :  { %144 = vsyncpa [#allocation4], 1 }
  0xb1   :  { %145 = vsyncpa [#allocation7], 1 }
  0xb2   :  { %146 = vsyncpa [#allocation5], 1 }

// kernel: tpu_custom_call.1
= control target key start
LH: loop header
LB: loop body
LE: loop exit
PB: predicated region body
PF: predicated region fallthrough
CT: control target
= control target key end

     0   :  { %7 = vsyncpa [#allocation4], 0  ;;  %s259_s0 = inlined_call_operand.hbm [shape: f32[8,256], index: 0, kind: input, shape index: {}]   ;;  %s260_s1 = inlined_call_operand.hbm [shape: f32[256,128], index: 1, kind: input, shape index: {}]   ;;  %s261_s2 = inlined_call_operand.hbm [shape: f32[8,128], index: 2, kind: output, shape index: {}]  }
   0x1   :  { %8 = vsyncpa [#allocation7], 0 }
   0x2   :  { %9 = vsyncpa [#allocation5], 0  ;;  %s15_s11 = sshll.u32 %s259_s0, 4  ;;  %s230_s12 = smov [#allocation3]   ;;  %s16_s11 = int_to_ptr.hbm [resolvable:$true] %s15_s11 }
   0x3   :  { %s17_s13 = sshll.u32 %s230_s12, 4  ;;  %s25_s16 = sshll.u32 %s260_s1, 4  ;;  %s18_s13 = int_to_ptr.vmem [resolvable:$true] %s17_s13  ;;  %s26_s16 = int_to_ptr.hbm [resolvable:$true] %s25_s16 }
   0x4   :  { %20 = dma.hbm_to_vmem [thread:$0]  %s16_s11, 256, %s18_s13, [#allocation4]  }
   0x5   :  { %s231_s17 = smov [#allocation6]   ;;  %s232_s19 = smov 128  }
   0x6   :  { %s27_s18 = sshll.u32 %s231_s17, 4  ;;  %s233_s20 = smov 8   ;;  %s28_s18 = int_to_ptr.vmem [resolvable:$true] %s27_s18 }
   0x7   :  { %33 = dma.hbm_to_vmem [thread:$0]  %s26_s16, 4096, %s28_s18, [#allocation7], %s232_s19, %s232_s19, %s233_s20  }
   0x8   :  { %224 = dma.done.wait [#allocation4], 256  }
   0x9   :  { %225 = vsyncadd [#allocation4], 4294967040 }
   0xa   :  { %226 = dma.done.wait [#allocation7], 4096  }
   0xb   :  { %227 = vsyncadd [#allocation7], 4294963200  ;;  %v65_v0 = vld [vmem:[#allocation6 + $0x78] sm:$0xff]  ;;  %v64_v2 = vld [vmem:[#allocation6 + $0x70] sm:$0xff]  ;;  %s234_s0 = smov [#allocation8]   ;;  %s136_s23 = sshll.u32 %s261_s2, 4  ;;  %s137_s23 = int_to_ptr.hbm [resolvable:$true] %s136_s23 }
   0xc   :  { %v81_v1 = vld [vmem:[#allocation6 + $0xf8] sm:$0xff]  ;;  %82 = vmatpush.msra.mxu0 %v65_v0  ;;  %v80_v3 = vld [vmem:[#allocation6 + $0xf0] sm:$0xff]  ;;  %v63_v4 = vld [vmem:[#allocation6 + $0x68] sm:$0xff]  ;;  %s134_s1 = sshll.u32 %s234_s0, 4  ;;  %s135_s1 = int_to_ptr.vmem [resolvable:$true] %s134_s1 }
   0xd   :  { %102 = vmatpush.msra.mxu1 %v81_v1  ;;  %v79_v5 = vld [vmem:[#allocation6 + $0xe8] sm:$0xff]  ;;  %v62_v6 = vld [vmem:[#allocation6 + $0x60] sm:$0xff]  ;;  %v61_v8 = vld [vmem:[#allocation6 + $0x58] sm:$0xff] }
   0xe   :  { %83 = vmatpush.msra.mxu0 %v64_v2  ;;  %v78_v7 = vld [vmem:[#allocation6 + $0xe0] sm:$0xff]  ;;  %v77_v9 = vld [vmem:[#allocation6 + $0xd8] sm:$0xff]  ;;  %v60_v10 = vld [vmem:[#allocation6 + $0x50] sm:$0xff] }
   0xf   :  { %103 = vmatpush.msra.mxu1 %v80_v3  ;;  %v76_v11 = vld [vmem:[#allocation6 + $0xd0] sm:$0xff]  ;;  %v59_v12 = vld [vmem:[#allocation6 + $0x48] sm:$0xff]  ;;  %v58_v14 = vld [vmem:[#allocation6 + $0x40] sm:$0xff] }
  0x10   :  { %84 = vmatpush.msra.mxu0 %v63_v4  ;;  %v75_v13 = vld [vmem:[#allocation6 + $0xc8] sm:$0xff]  ;;  %v74_v15 = vld [vmem:[#allocation6 + $0xc0] sm:$0xff]  ;;  %v57_v16 = vld [vmem:[#allocation6 + $0x38] sm:$0xff] }
  0x11   :  { %104 = vmatpush.msra.mxu1 %v79_v5  ;;  %v73_v17 = vld [vmem:[#allocation6 + $0xb8] sm:$0xff]  ;;  %v56_v18 = vld [vmem:[#allocation6 + $0x30] sm:$0xff]  ;;  %v55_v20 = vld [vmem:[#allocation6 + $0x28] sm:$0xff] }
  0x12   :  { %85 = vmatpush.msra.mxu0 %v62_v6  ;;  %v72_v19 = vld [vmem:[#allocation6 + $0xb0] sm:$0xff]  ;;  %v71_v21 = vld [vmem:[#allocation6 + $0xa8] sm:$0xff]  ;;  %v54_v22 = vld [vmem:[#allocation6 + $0x20] sm:$0xff] }
  0x13   :  { %105 = vmatpush.msra.mxu1 %v78_v7  ;;  %v70_v23 = vld [vmem:[#allocation6 + $0xa0] sm:$0xff]  ;;  %v53_v24 = vld [vmem:[#allocation6 + $0x18] sm:$0xff]  ;;  %v52_v26 = vld [vmem:[#allocation6 + $0x10] sm:$0xff] }
  0x14   :  { %86 = vmatpush.msra.mxu0 %v61_v8  ;;  %v69_v25 = vld [vmem:[#allocation6 + $0x98] sm:$0xff]  ;;  %v68_v27 = vld [vmem:[#allocation6 + $0x90] sm:$0xff]  ;;  %v51_v28 = vld [vmem:[#allocation6 + $0x8] sm:$0xff] }
  0x15   :  { %106 = vmatpush.msra.mxu1 %v77_v9  ;;  %v67_v29 = vld [vmem:[#allocation6 + $0x88] sm:$0xff]  ;;  %v50_v30 = vld [vmem:[#allocation6] sm:$0xff]  ;;  %v48_v32 = vld [vmem:[#allocation3] sm:$0xff] }
  0x16   :  { %87 = vmatpush.msra.mxu0 %v60_v10  ;;  %v66_v31 = vld [vmem:[#allocation6 + $0x80] sm:$0xff]  ;;  %v49_v33 = vld [vmem:[#allocation3 + $0x8] sm:$0xff] }
  0x17   :  { %107 = vmatpush.msra.mxu1 %v76_v11 }
  0x18   :  { %88 = vmatpush.msra.mxu0 %v59_v12 }
  0x19   :  { %108 = vmatpush.msra.mxu1 %v75_v13 }
  0x1a   :  { %89 = vmatpush.msra.mxu0 %v58_v14 }
  0x1b   :  { %109 = vmatpush.msra.mxu1 %v74_v15 }
  0x1c   :  { %90 = vmatpush.msra.mxu0 %v57_v16 }
  0x1d   :  { %110 = vmatpush.msra.mxu1 %v73_v17 }
  0x1e   :  { %91 = vmatpush.msra.mxu0 %v56_v18 }
  0x1f   :  { %111 = vmatpush.msra.mxu1 %v72_v19 }
  0x20   :  { %92 = vmatpush.msra.mxu0 %v55_v20 }
  0x21   :  { %112 = vmatpush.msra.mxu1 %v71_v21 }
  0x22   :  { %93 = vmatpush.msra.mxu0 %v54_v22 }
  0x23   :  { %113 = vmatpush.msra.mxu1 %v70_v23 }
  0x24   :  { %94 = vmatpush.msra.mxu0 %v53_v24 }
  0x25   :  { %114 = vmatpush.msra.mxu1 %v69_v25 }
  0x26   :  { %95 = vmatpush.msra.mxu0 %v52_v26 }
  0x27   :  { %115 = vmatpush.msra.mxu1 %v68_v27 }
  0x28   :  { %96 = vmatpush.msra.mxu0 %v51_v28 }
  0x29   :  { %116 = vmatpush.msra.mxu1 %v67_v29 }
  0x2a   :  { %97 = vmatpush.msra.mxu0 %v50_v30 }
  0x2b   :  { %117 = vmatpush.msra.mxu1 %v66_v31  ;;  %98 = vmatmul.f32.vlgmr.msra.gmra.mxu0 %v48_v32 }
  0x2c   :  { %118 = vmatmul.f32.vlgmr.msra.gmra.mxu1 %v49_v33 }
  0xa8   :  { %v99_v34 = vpop.f32.mrf.mxu0 }
  0xa9   :  { %v119_v35 = vpop.f32.mrf.mxu1 }
  0xaa   :  { %v120_v36 = vadd.f32 %v119_v35, %v99_v34 }
  0xac   :  { %128 = vst [vmem:[#allocation8] sm:$0xff] %v120_v36 }
  0xad   :  { %139 = dma.vmem_to_hbm [thread:$0]  %s135_s1, 128, %s137_s23, [#allocation5]  }
  0xae   :  { %228 = dma.done.wait [#allocation5], 128  }
  0xaf   :  { %229 = vsyncadd [#allocation5], 4294967168 }
  0xb0   :  { %144 = vsyncpa [#allocation4], 1 }
  0xb1   :  { %145 = vsyncpa [#allocation7], 1 }
  0xb2   :  { %146 = vsyncpa [#allocation5], 1 }

</bundles_post_ra>
